<compile_context>
chip_gen: v5e
topology: v5e:2x2
jax: 0.10.0
libtpu: 0.0.40
codegen_flags: <defaults>
</compile_context>

<pallas_src>
import functools

import jax
import jax.numpy as jnp
from jax import lax
from jax.experimental import pallas as pl
from jax.experimental.pallas import tpu as pltpu

_LANE = 128
_TARGET_BLOCK_BYTES = 2 * 1024 * 1024   # aim for ~2 MiB of input per block


def _layernorm3d_kernel(x_ref, w_ref, b_ref, o_ref, *, eps: float):
    # x_ref: (C, TS) tile — channels on sublanes, spatial slab on lanes.
    x = x_ref[...].astype(jnp.float32)
    u = jnp.mean(x, axis=0, keepdims=True)            # (1, TS) mean over channels
    d = x - u
    s = jnp.mean(d * d, axis=0, keepdims=True)        # biased variance over channels
    inv = lax.rsqrt(s + eps)                          # EUP transcendental on (1, TS)
    w = w_ref[...]                                    # (C, 1) f32, loaded once
    b = b_ref[...]                                    # (C, 1) f32
    y = w * (d * inv) + b
    o_ref[...] = y.astype(o_ref.dtype)


def _vmem_plan():
    """(vmem_limit_bytes, per-kernel block budget), generation aware."""
    try:
        cap = int(pltpu.get_tpu_info().vmem_capacity_bytes)
    except Exception:
        cap = 64 * 1024 * 1024          # conservative fallback (v7x per-TC size)
    # v5e/v6e: 128 MiB physical -> 64 MiB limit.  v7x: 64 MiB -> 32 MiB limit.
    limit = min(cap // 2, 64 * 1024 * 1024)
    budget = (limit * 3) // 4           # headroom for compiler scratch / pipelining
    return limit, budget


def _choose_ts(s: int, c: int, in_itemsize: int, out_itemsize: int,
               vmem_budget: int, n_batch: int) -> int:
    """Lane-tile size: multiple of 128 (or the full extent for tiny S)."""
    if s <= _LANE:
        return s                        # full-extent block; no 128 alignment needed

    s_cap = (s // _LANE) * _LANE        # largest multiple of 128 that is <= S

    # VMEM bytes per lane-column of tile: double-buffered input + output blocks
    # plus the f32 intermediates (upcast x, centred d, result y).
    per_lane = c * (2 * in_itemsize + 2 * out_itemsize + 3 * 4)
    ts_budget = max(_LANE, (vmem_budget // per_lane) // _LANE * _LANE)

    # Byte-targeted block size: ~_TARGET_BLOCK_BYTES of input per block.
    ts_target = max(_LANE, (_TARGET_BLOCK_BYTES // (c * in_itemsize)) // _LANE * _LANE)

    ts = min(s_cap, ts_budget, ts_target)

    # Megacore (v7x has 2 TensorCores): make sure the parallel grid has >= 2
    # steps so the work can be sharded across cores.
    if n_batch * pl.cdiv(s, ts) < 2 and ts > _LANE:
        half = pl.cdiv(s, 2)
        ts = min(ts, max(_LANE, pl.cdiv(half, _LANE) * _LANE))
    return ts


def layernorm3d(x: jax.Array, weight: jax.Array, bias: jax.Array,
                eps: float = 1e-6) -> jax.Array:
    """Pallas equivalent of LayerNorm3d.forward. x: (N, C, D, H, W)."""
    N, C, D, H, W = x.shape
    S = D * H * W

    x2 = x.reshape(N, C, S)                              # no-copy reshape
    w2 = weight.reshape(C, 1).astype(jnp.float32)
    b2 = bias.reshape(C, 1).astype(jnp.float32)

    vmem_limit, vmem_budget = _vmem_plan()
    TS = _choose_ts(S, C, x.dtype.itemsize, x.dtype.itemsize, vmem_budget, N)
    grid = (N, pl.cdiv(S, TS))                           # last spatial block ragged

    out = pl.pallas_call(
        functools.partial(_layernorm3d_kernel, eps=eps),
        out_shape=jax.ShapeDtypeStruct((N, C, S), x.dtype),
        grid_spec=pltpu.PrefetchScalarGridSpec(
            num_scalar_prefetch=0,
            grid=grid,
            in_specs=[
                # x: one batch element, all channels, one spatial slab
                pl.BlockSpec((None, C, TS), lambda n, j: (n, 0, j)),
                # per-channel weight / bias, replicated to every grid point
                pl.BlockSpec((C, 1), lambda n, j: (0, 0)),
                pl.BlockSpec((C, 1), lambda n, j: (0, 0)),
            ],
            out_specs=pl.BlockSpec((None, C, TS), lambda n, j: (n, 0, j)),
        ),
        compiler_params=pltpu.CompilerParams(
            dimension_semantics=("parallel", "parallel"),
            vmem_limit_bytes=vmem_limit,
        ),
    )(x2, w2, b2)

    return out.reshape(N, C, D, H, W)


def _reference(x, weight, bias, eps=1e-6):
    u = jnp.mean(x, axis=1, keepdims=True)
    s = jnp.mean((x - u) ** 2, axis=1, keepdims=True)
    y = (x - u) / jnp.sqrt(s + eps)
    return weight[None, :, None, None, None] * y + bias[None, :, None, None, None]


if __name__ == "__main__":
    key = jax.random.PRNGKey(0)

    N, C, D, H, W = 2, 4, 8, 8, 8
    x = jax.random.normal(key, (N, C, D, H, W), dtype=jnp.float32)

    # Deterministic parameter init matching nn.Parameter(torch.ones/zeros(C)).
    weight = jnp.ones((C,), dtype=jnp.float32)
    bias = jnp.zeros((C,), dtype=jnp.float32)

    out = layernorm3d(x, weight, bias, eps=1e-6)
    out = jax.block_until_ready(out)

    ref = _reference(x, weight, bias, eps=1e-6)
    assert out.shape == x.shape
    assert jnp.allclose(out, ref, atol=1e-5, rtol=1e-5), "mismatch vs reference"

    # Non-multiple-of-128 spatial extent (S = 105 < 128 -> full-extent block).
    D2, H2, W2 = 5, 7, 3
    x_odd = jax.random.normal(key, (N, C, D2, H2, W2), dtype=jnp.float32)
    out_odd = jax.block_until_ready(layernorm3d(x_odd, weight, bias, eps=1e-6))
    ref_odd = _reference(x_odd, weight, bias, eps=1e-6)
    assert jnp.allclose(out_odd, ref_odd, atol=1e-5, rtol=1e-5), "mismatch (small S)"

    # Spatial extent that is > 128 but not a multiple of 128 (ragged tail block,
    # exercises the masked tail store without any host-side pad/slice).
    D3, H3, W3 = 6, 7, 5                                  # S = 210
    x_rag = jax.random.normal(key, (N, C, D3, H3, W3), dtype=jnp.float32)
    out_rag = jax.block_until_ready(layernorm3d(x_rag, weight, bias, eps=1e-6))
    ref_rag = _reference(x_rag, weight, bias, eps=1e-6)
    assert jnp.allclose(out_rag, ref_rag, atol=1e-5, rtol=1e-5), "mismatch (ragged path)"

    print("KERNEL_OK")
</pallas_src>

<mosaic_0001>
module attributes {stable_mosaic.version = 11 : i64} {
  func.func @_layernorm3d_kernel(%arg0: i32, %arg1: i32, %arg2: memref<1x4x512xf32, #tpu.memory_space<vmem>>, %arg3: memref<4x1xf32, #tpu.memory_space<vmem>>, %arg4: memref<4x1xf32, #tpu.memory_space<vmem>>, %arg5: memref<1x4x512xf32, #tpu.memory_space<vmem>>) attributes {dimension_semantics = [#tpu.dimension_semantics<parallel>, #tpu.dimension_semantics<parallel>], iteration_bounds = array<i64: 2, 1>, scalar_prefetch = 0 : i64, scratch_operands = 0 : i64, tpu.core_type = #tpu.core_type<tc>, window_params = [{transform_indices = @transform_0, window_bounds = array<i64: 1, 4, 512>}, {pipeline_mode = #tpu.pipeline_mode<synchronous>, transform_indices = @transform_1, window_bounds = array<i64: 4, 1>}, {pipeline_mode = #tpu.pipeline_mode<synchronous>, transform_indices = @transform_2, window_bounds = array<i64: 4, 1>}, {transform_indices = @transform_3, window_bounds = array<i64: 1, 4, 512>}]} {
    %c0 = arith.constant 0 : index
    %c0_0 = arith.constant 0 : index
    %c0_1 = arith.constant 0 : index
    %0 = vector.load %arg2[%c0, %c0_0, %c0_1] : memref<1x4x512xf32, #tpu.memory_space<vmem>>, vector<1x4x512xf32>
    %1 = vector.shape_cast %0 : vector<1x4x512xf32> to vector<4x512xf32>
    %cst = arith.constant dense<0.000000e+00> : vector<512xf32>
    %2 = vector.multi_reduction <add>, %1, %cst [0] : vector<4x512xf32> to vector<512xf32>
    %3 = vector.shape_cast %2 : vector<512xf32> to vector<1x512xf32>
    %cst_2 = arith.constant 4.000000e+00 : f32
    %4 = vector.broadcast %cst_2 : f32 to vector<1x512xf32>
    %5 = arith.divf %3, %4 : vector<1x512xf32>
    %6 = vector.broadcast %5 : vector<1x512xf32> to vector<4x512xf32>
    %7 = arith.subf %1, %6 : vector<4x512xf32>
    %8 = arith.mulf %7, %7 : vector<4x512xf32>
    %cst_3 = arith.constant dense<0.000000e+00> : vector<512xf32>
    %9 = vector.multi_reduction <add>, %8, %cst_3 [0] : vector<4x512xf32> to vector<512xf32>
    %10 = vector.shape_cast %9 : vector<512xf32> to vector<1x512xf32>
    %cst_4 = arith.constant 4.000000e+00 : f32
    %11 = vector.broadcast %cst_4 : f32 to vector<1x512xf32>
    %12 = arith.divf %10, %11 : vector<1x512xf32>
    %cst_5 = arith.constant 9.99999997E-7 : f32
    %13 = vector.broadcast %cst_5 : f32 to vector<1x512xf32>
    %14 = arith.addf %12, %13 : vector<1x512xf32>
    %15 = math.rsqrt %14 : vector<1x512xf32>
    %c0_6 = arith.constant 0 : index
    %c0_7 = arith.constant 0 : index
    %16 = vector.load %arg3[%c0_6, %c0_7] : memref<4x1xf32, #tpu.memory_space<vmem>>, vector<4x1xf32>
    %c0_8 = arith.constant 0 : index
    %c0_9 = arith.constant 0 : index
    %17 = vector.load %arg4[%c0_8, %c0_9] : memref<4x1xf32, #tpu.memory_space<vmem>>, vector<4x1xf32>
    %18 = vector.broadcast %15 : vector<1x512xf32> to vector<4x512xf32>
    %19 = arith.mulf %7, %18 : vector<4x512xf32>
    %20 = vector.broadcast %16 : vector<4x1xf32> to vector<4x512xf32>
    %21 = arith.mulf %20, %19 : vector<4x512xf32>
    %22 = vector.broadcast %17 : vector<4x1xf32> to vector<4x512xf32>
    %23 = arith.addf %21, %22 : vector<4x512xf32>
    %c0_10 = arith.constant 0 : index
    %c0_11 = arith.constant 0 : index
    %c0_12 = arith.constant 0 : index
    %24 = vector.load %arg5[%c0_10, %c0_11, %c0_12] : memref<1x4x512xf32, #tpu.memory_space<vmem>>, vector<1x4x512xf32>
    %25 = vector.shape_cast %24 : vector<1x4x512xf32> to vector<4x512xf32>
    %26 = vector.shape_cast %23 : vector<4x512xf32> to vector<1x4x512xf32>
    tpu.vector_store %arg5[%c0_10, %c0_11, %c0_12], %26 {strides = array<i32>} : memref<1x4x512xf32, #tpu.memory_space<vmem>>, vector<1x4x512xf32>,
    return
  }
  func.func @transform_0(%arg0: i32, %arg1: i32) -> (i32, i32, i32) {
    %c0_i32 = arith.constant 0 : i32
    %c0_i32_0 = arith.constant 0 : i32
    return %arg0, %c0_i32, %arg1 : i32, i32, i32
  }
  func.func @transform_1(%arg0: i32, %arg1: i32) -> (i32, i32) {
    %c0_i32 = arith.constant 0 : i32
    %c0_i32_0 = arith.constant 0 : i32
    %c0_i32_1 = arith.constant 0 : i32
    return %c0_i32, %c0_i32_0 : i32, i32
  }
  func.func @transform_2(%arg0: i32, %arg1: i32) -> (i32, i32) {
    %c0_i32 = arith.constant 0 : i32
    %c0_i32_0 = arith.constant 0 : i32
    %c0_i32_1 = arith.constant 0 : i32
    return %c0_i32, %c0_i32_0 : i32, i32
  }
  func.func @transform_3(%arg0: i32, %arg1: i32) -> (i32, i32, i32) {
    %c0_i32 = arith.constant 0 : i32
    %c0_i32_0 = arith.constant 0 : i32
    return %arg0, %c0_i32, %arg1 : i32, i32, i32
  }
}

</mosaic_0001>

<bundles_post_ra>
// kernel: tpu_custom_call.1
= control target key start
LH: loop header
LB: loop body
LE: loop exit
PB: predicated region body
PF: predicated region fallthrough
CT: control target
= control target key end

     0   :  { %8 = vsyncpa [#allocation3], 0  ;;  %s921_s0 = inlined_call_operand.hbm [shape: f32[2,4,512], index: 0, kind: input, shape index: {}]   ;;  %s922_s1 = inlined_call_operand.vmem [shape: f32[4,1], index: 1, kind: input, shape index: {}]   ;;  %s923_s2 = inlined_call_operand.vmem [shape: f32[4,1], index: 2, kind: input, shape index: {}]   ;;  %s924_s3 = inlined_call_operand.hbm [shape: f32[2,4,512], index: 3, kind: output, shape index: {}]  }
   0x1   :  { %10 = vsyncpa [#allocation3 + $0x1], 0 }
   0x2   :  { %11 = vsyncpa [#allocation4], 0 }
   0x3   :  { %13 = vsyncpa [#allocation4 + $0x1], 0  ;;  %s755_s12 = smov 0   ;;  %s757_s13 = smov 0  }
   0x4   :  { %s759_s14 = smov 0   ;;  %s761_s15 = smov 0  }
   0x5   :  { %s763_s16 = smov 0   ;;  %s765_s17 = smov 0  }
   0x6 LB: > { %s527_s18 = sadd.s32 4294967295, %s731_s17   ;;  %s528_s19 = sadd.s32 4294967294, %s731_s17   ;;  %s731_s17 = sphi %s765_s17, %s19_s17   ;;  %s727_s16 = sphi %s763_s16, %s937_s16   ;;  %s723_s15 = sphi %s761_s15, %s936_s15   ;;  %s719_s14 = sphi %s759_s14, %s935_s14   ;;  %s715_s13 = sphi %s757_s13, %s934_s13   ;;  %s711_s12 = sphi %s755_s12, %s933_s12  }
   0x7   : > { %s31_s20 = sadd.s32 1, %s727_s16  ;;  %s40_s21 = sadd.s32 1, %s719_s14 }
   0x8   : > { %p33_p0 = scmp.ge.s32.totalorder %s31_s20, 2  ;;  %p47_p1 = scmp.ne.s32.totalorder %s719_s14, %s715_s13 }
   0x9   : > { %p48_p2 = scmp.eq.s32.totalorder %s731_s17, 0  ;;  %p53_p3 = scmp.ne.s32.totalorder %s715_s13, %s711_s12 }
   0xa   : > { %s939_s20 = smov (%p33_p0, %s31_s20), 0  ;;  %p54_p5 = scmp.eq.s32.totalorder %s527_s18, 0 }
   0xb   : > { %p796_p4 = por %p48_p2, %p47_p1  ;;  %s35_s23 = ssub.s32 %s727_s16, %s939_s20 }
   0xc   : > { %p121_p6 = scmp.eq.s32.totalorder %s527_s18, 1  ;;  %p38_p7 = scmp.eq.s32.totalorder %s35_s23, 0 }
   0xd   : > { %p802_p8 = por %p54_p5, %p53_p3  ;;  %p127_p10 = scmp.eq.s32.totalorder %s528_s19, 1 }
   0xe   : > { %p806_p9 = por %p121_p6, %p47_p1  ;;  %p530_p12 = scmp.ge.s32.totalorder %s731_s17, 2 }
   0xf   : > { %s811_s26 = scalar_select %p38_p7, %s719_s14, %s40_s21  }
  0x10   : > { %p813_p11 = por %p127_p10, %p53_p3  ;;  %p556_p13 = scmp.lt.s32.totalorder %s731_s17, 2 }
  0x11   : > { %s153_s28 = sand.u32 1, %s719_s14   ;;  %s542_s30 = sshll.u32 %s727_s16, 4 }
  0x12   : > { %s531_s29 = sshll.u32 %s153_s28, 4  ;;  %s164_s6 = scalar_lea.hbm %s921_s0, %s542_s30 }
  0x13   : > { %s157_s7 = scalar_lea.vmem [#allocation2], %s531_s29  ;;  %s166_s9 = sshll.u32 %s164_s6, 4  ;;  %s167_s9 = int_to_ptr.hbm [resolvable:$true] %s166_s9 }
  0x14   : > { %s168_s8 = sshll.u32 %s157_s7, 4  ;;  %p549_p0 = pnand %p556_p13, %p796_p4  ;;  %s169_s8 = int_to_ptr.vmem [resolvable:$true] %s168_s8 }
  0x15   : > { %p534_p1 = scmp.ge.s32.totalorder %s731_s17, 1  ;;  %p173_p2 = scmp.lt.s32.totalorder %s731_s17, 3 }
  0x16   : > { %s154_s10 = scalar_lea.sflag [#allocation3], %s153_s28 }
  0x17   : > { %551 = dma.hbm_to_vmem [thread:$0]  (!%p549_p0), %s167_s9, 256, %s169_s8, %s154_s10  }
  0x18   : > { %p174_p3 = pnand %p534_p1, %p173_p2 }
  0x19   : > { %s829_s11 = sand.u32 (!%p174_p3), 1, %s715_s13  }
  0x1a   : > { %177 = sbr.rel (%p174_p3) target bundleno = 166 (0xa6), region = 32  ;;  %s535_s18 = sshll.u32 (!%p174_p3), %s829_s11, 4 }
  0x1b   : > { %s180_s19 = scalar_lea.sflag (!%p174_p3), [#allocation3], %s829_s11  ;;  %s183_s21 = scalar_lea.vmem (!%p174_p3), [#allocation2], %s535_s18 }
  0x1f   : > { %702 = dma.done.wait (%p802_p8), %s180_s19, 256  }
  0x20   : > { %704 = vsyncadd (%p802_p8), %s180_s19, 4294967040  ;;  %v733_v0 = vmov 0   ;;  %v367_v1 = vld [vmem:[%s922_s1] sm:$0xf]  ;;  %v209_v2 = vld [vmem:[%s183_s21] sm:$0xff]  ;;  %v734_v4 = vmov 4.0  }
  0x21   : > { %608 = vset.pattern.permute.xlu0 %v733_v0  ;;  %v210_v3 = vld [vmem:[%s183_s21 + $0x8] sm:$0xff]  ;;  %213 = vst [vmem:[#allocation1] ss:$2 sm:$0xff] %v209_v2  ;;  %609 = vrcp.f32 %v734_v4  ;;  %vm224_vm0 = vcmask 1043456   ;;  %s543_s24 = sshll.u32 %s723_s15, 4  ;;  %s206_s6 = scalar_lea.vmem [#allocation5], %s535_s18 }
  0x22   : > { %383 = vperm.xlu0 %608, %v367_v1   ;;  %215 = vst [vmem:[#allocation1 + $0x10] ss:$2 sm:$0xff] %v210_v3  ;;  %v368_v5 = vld [vmem:[%s923_s2] sm:$0xf]  ;;  %s438_s5 = scalar_lea.hbm %s924_s3, %s543_s24  ;;  %s440_s7 = sshll.u32 %s206_s6, 4  ;;  %s441_s7 = int_to_ptr.vmem [resolvable:$true] %s440_s7 }
  0x23   : > { %s442_s15 = sshll.u32 %s438_s5, 4  ;;  %s425_s8 = scalar_lea.sflag [#allocation4], %s829_s11  ;;  %s443_s15 = int_to_ptr.hbm [resolvable:$true] %s442_s15 }
  0x24   : > { %s663_s9 = sshra.s32 %s443_s15, 4  ;;  %s669_s21 = scalar_lea.hbm %s924_s3, 32  ;;  %s664_s9 = int_to_ptr.hbm [resolvable:$true] %s663_s9 }
  0x25   : > { %s665_s10 = scalar_lea.hbm %s664_s9, 16  ;;  %p670_p7 = scmp.lt.s32.totalorder %s664_s9, %s924_s3 }
  0x26   : > { %p666_p4 = scmp.ne.s32.totalorder %s664_s9, %s665_s10  ;;  %p671_p8 = scmp.lt.s32.totalorder %s669_s21, %s665_s10 }
  0x27   : > { %v610_v8 = vpop.eup %609 }
  0x28   : > { %v216_v6 = vld.sshfl [vmem:[#allocation1] sm:$0xff pattern:$0x75316420]  ;;  %v217_v7 = vld.sshfl [vmem:[#allocation1 + $0x8] sm:$0xff pattern:$0x75316420]  ;;  %vm258_vm1 = vweird.f32 %v610_v8  ;;  %p667_p5 = pnand %p666_p4, %p806_p9  ;;  %p672_p10 = por %p671_p8, %p670_p7 }
  0x29   : > { %v218_v9 = vld.sshfl [vmem:[#allocation1 + $0x10] sm:$0xff pattern:$0x75316420]  ;;  %v219_v10 = vld.sshfl [vmem:[#allocation1 + $0x18] sm:$0xff pattern:$0x75316420] }
  0x2a   : > { %405 = vperm.xlu0 %608, %v368_v5   ;;  %v254_v11 = vmul.f32 4.0, %v610_v8  ;;  %v225_v12 = vsel %vm224_vm0, %v216_v6, 0.0  ;;  %v232_v13 = vsel %vm224_vm0, %v217_v7, 0.0  ;;  %v239_v14 = vsel %vm224_vm0, %v218_v9, 0.0  ;;  %p668_p6 = pneg %p667_p5 }
  0x2b   : > { %v226_v15 = vrot.slane %v225_v12, 4  ;;  %v233_v16 = vrot.slane %v232_v13, 4  ;;  %v240_v17 = vrot.slane %v239_v14, 4  ;;  %v246_v18 = vsel %vm224_vm0, %v219_v10, 0.0 }
  0x2c   : > { %v255_v19 = vsub.f32 1.0, %v254_v11  ;;  %v247_v20 = vrot.slane %v246_v18, 4  ;;  %p673_p13 = pnand %p672_p10, %p668_p6 }
  0x2d   : > { %v227_v21 = vadd.f32 %v226_v15, %v225_v12  ;;  %v234_v22 = vadd.f32 %v233_v16, %v232_v13  ;;  %v241_v23 = vadd.f32 %v240_v17, %v239_v14 }
  0x2e   : > { %v256_v24 = vmul.f32 %v610_v8, %v255_v19  ;;  %v248_v25 = vadd.f32 %v247_v20, %v246_v18 }
  0x2f   : > { %v228_v26 = vrot.slane %v227_v21, 2  ;;  %v235_v27 = vrot.slane %v234_v22, 2  ;;  %v242_v28 = vrot.slane %v241_v23, 2 }
  0x30   : > { %v257_v29 = vadd.f32 %v610_v8, %v256_v24  ;;  %v249_v30 = vrot.slane %v248_v25, 2 }
  0x31   : > { %v229_v31 = vadd.f32 %v228_v26, %v227_v21  ;;  %v236_v32 = vadd.f32 %v235_v27, %v234_v22  ;;  %v243_v33 = vadd.f32 %v242_v28, %v241_v23 }
  0x32   : > { %v250_v34 = vadd.f32 %v249_v30, %v248_v25  ;;  %v259_v38 = vsel %vm258_vm1, %v610_v8, %v257_v29 }
  0x33   : > { %v230_v35 = vrot.slane %v229_v31, 1  ;;  %v237_v36 = vrot.slane %v236_v32, 1  ;;  %v244_v37 = vrot.slane %v243_v33, 1 }
  0x34   : > { %v251_v39 = vrot.slane %v250_v34, 1 }
  0x35   : > { %v231_v40 = vadd.f32 %v230_v35, %v229_v31  ;;  %v238_v41 = vadd.f32 %v237_v36, %v236_v32  ;;  %v245_v42 = vadd.f32 %v244_v37, %v243_v33 }
  0x36   : > { %v252_v43 = vadd.f32 %v251_v39, %v250_v34 }
  0x37   : > { %v260_v44 = vmul.f32 %v259_v38, %v231_v40  ;;  %v261_v45 = vmul.f32 %v259_v38, %v238_v41  ;;  %v262_v46 = vmul.f32 %v259_v38, %v245_v42 }
  0x38   : > { %v263_v47 = vmul.f32 %v259_v38, %v252_v43 }
  0x39   : > { %v268_v48 = vrot.slane %v261_v45, 4 }
  0x3a   : > { %v269_v49 = vrot.slane %v263_v47, 4 }
  0x3b   : > { %v270_v50 = vsel %vm224_vm0, %v260_v44, %v268_v48 }
  0x3c   : > { %v271_v51 = vsel %vm224_vm0, %v262_v46, %v269_v49  ;;  %v851_v52 = vsub.f32 %v209_v2, %v270_v50 }
  0x3d   : > { %v853_v53 = vsub.f32 %v210_v3, %v271_v51 }
  0x3e   : > { %v276_v54 = vmul.f32 %v851_v52, %v851_v52 }
  0x3f   : > { %v277_v55 = vmul.f32 %v853_v53, %v853_v53 }
  0x40   : > { %280 = vst [vmem:[#allocation1] ss:$2 sm:$0xff] %v276_v54 }
  0x41   : > { %282 = vst [vmem:[#allocation1 + $0x10] ss:$2 sm:$0xff] %v277_v55 }
  0x47   : > { %v283_v56 = vld.sshfl [vmem:[#allocation1] sm:$0xff pattern:$0x75316420]  ;;  %v284_v57 = vld.sshfl [vmem:[#allocation1 + $0x8] sm:$0xff pattern:$0x75316420] }
  0x48   : > { %v285_v58 = vld.sshfl [vmem:[#allocation1 + $0x10] sm:$0xff pattern:$0x75316420]  ;;  %v286_v59 = vld.sshfl [vmem:[#allocation1 + $0x18] sm:$0xff pattern:$0x75316420] }
  0x49   : > { %v291_v60 = vsel %vm224_vm0, %v283_v56, 0.0  ;;  %v298_v61 = vsel %vm224_vm0, %v284_v57, 0.0  ;;  %v305_v62 = vsel %vm224_vm0, %v285_v58, 0.0  ;;  %v312_v63 = vsel %vm224_vm0, %v286_v59, 0.0 }
  0x4a   : > { %v292_v0 = vrot.slane %v291_v60, 4  ;;  %v299_v1 = vrot.slane %v298_v61, 4  ;;  %v306_v2 = vrot.slane %v305_v62, 4  ;;  %v313_v3 = vrot.slane %v312_v63, 4 }
  0x4c   : > { %v293_v4 = vadd.f32 %v292_v0, %v291_v60  ;;  %v300_v5 = vadd.f32 %v299_v1, %v298_v61  ;;  %v307_v6 = vadd.f32 %v306_v2, %v305_v62  ;;  %v314_v7 = vadd.f32 %v313_v3, %v312_v63 }
  0x4e   : > { %v294_v8 = vrot.slane %v293_v4, 2  ;;  %v301_v9 = vrot.slane %v300_v5, 2  ;;  %v308_v10 = vrot.slane %v307_v6, 2  ;;  %v315_v11 = vrot.slane %v314_v7, 2 }
  0x50   : > { %v295_v12 = vadd.f32 %v294_v8, %v293_v4  ;;  %v302_v13 = vadd.f32 %v301_v9, %v300_v5  ;;  %v309_v14 = vadd.f32 %v308_v10, %v307_v6  ;;  %v316_v15 = vadd.f32 %v315_v11, %v314_v7 }
  0x52   : > { %v296_v16 = vrot.slane %v295_v12, 1  ;;  %v303_v17 = vrot.slane %v302_v13, 1  ;;  %v310_v18 = vrot.slane %v309_v14, 1  ;;  %v317_v19 = vrot.slane %v316_v15, 1 }
  0x54   : > { %v297_v20 = vadd.f32 %v296_v16, %v295_v12  ;;  %v304_v21 = vadd.f32 %v303_v17, %v302_v13  ;;  %v311_v22 = vadd.f32 %v310_v18, %v309_v14  ;;  %v318_v23 = vadd.f32 %v317_v19, %v316_v15 }
  0x56   : > { %v319_v24 = vmul.f32 %v297_v20, %v259_v38  ;;  %v320_v25 = vmul.f32 %v304_v21, %v259_v38  ;;  %v321_v26 = vmul.f32 %v311_v22, %v259_v38  ;;  %v322_v27 = vmul.f32 %v318_v23, %v259_v38 }
  0x58   : > { %v323_v28 = vadd.f32 1e-06, %v319_v24  ;;  %v324_v29 = vadd.f32 1e-06, %v320_v25  ;;  %v325_v30 = vadd.f32 1e-06, %v321_v26 }
  0x59   : > { %v326_v31 = vadd.f32 1e-06, %v322_v27 }
  0x5a   : > { %611 = vrsqrt.f32 %v323_v28  ;;  %vm343_vm2 = vweird.f32 %v324_v29  ;;  %vm333_vm4 = vweird.f32 %v323_v28  ;;  %vm353_vm7 = vweird.f32 %v325_v30 }
  0x5b   : > { %613 = vrsqrt.f32 %v324_v29  ;;  %vm363_vm8 = vweird.f32 %v326_v31 }
  0x5c   : > { %615 = vrsqrt.f32 %v325_v30 }
  0x5d   : > { %617 = vrsqrt.f32 %v326_v31 }
  0x60   : > { %v612_v32 = vpop.eup %611 }
  0x61   : > { %v614_v33 = vpop.eup %613  ;;  %v328_v34 = vmul.f32 %v612_v32, %v323_v28  ;;  %vm334_vm5 = vweird.f32 %v612_v32 }
  0x62   : > { %v616_v35 = vpop.eup %615  ;;  %v338_v36 = vmul.f32 %v614_v33, %v324_v29  ;;  %vm344_vm3 = vweird.f32 %v614_v33  ;;  %vm867_vm10 = vmor %vm333_vm4, %vm334_vm5 }
  0x63   : > { %v618_v37 = vpop.eup %617  ;;  %v329_v39 = vmul.f32 %v612_v32, %v328_v34  ;;  %v348_v40 = vmul.f32 %v616_v35, %v325_v30  ;;  %vm863_vm6 = vmor %vm343_vm2, %vm344_vm3  ;;  %vm354_vm11 = vweird.f32 %v616_v35 }
  0x64   : > { %v339_v41 = vmul.f32 %v614_v33, %v338_v36  ;;  %v358_v42 = vmul.f32 %v618_v37, %v326_v31  ;;  %vm364_vm9 = vweird.f32 %v618_v37  ;;  %vm355_vm13 = vmor %vm353_vm7, %vm354_vm11 }
  0x65   : > { %v330_v43 = vmul.f32 0.5, %v329_v39  ;;  %v349_v38 = vmul.f32 %v616_v35, %v348_v40  ;;  %vm365_vm12 = vmor %vm363_vm8, %vm364_vm9 }
  0x66   : > { %v340_v44 = vmul.f32 0.5, %v339_v41  ;;  %v359_v47 = vmul.f32 %v618_v37, %v358_v42 }
  0x67   : > { %v331_v45 = vsub.f32 1.5, %v330_v43  ;;  %v350_v46 = vmul.f32 0.5, %v349_v38 }
  0x68   : > { %v341_v48 = vsub.f32 1.5, %v340_v44  ;;  %v360_v55 = vmul.f32 0.5, %v359_v47 }
  0x69   : > { %v332_v50 = vmul.f32 %v612_v32, %v331_v45  ;;  %v351_v54 = vsub.f32 1.5, %v350_v46 }
  0x6a   : > { %v342_v56 = vmul.f32 %v614_v33, %v341_v48  ;;  %v361_v58 = vsub.f32 1.5, %v360_v55 }
  0x6b   : > { %v352_v57 = vmul.f32 %v616_v35, %v351_v54  ;;  %v336_v59 = vsel %vm867_vm10, %v612_v32, %v332_v50 }
  0x6c   : > { %v346_v60 = vsel %vm863_vm6, %v614_v33, %v342_v56  ;;  %v362_v61 = vmul.f32 %v618_v37, %v361_v58 }
  0x6d   : > { %v373_v62 = vrot.slane %v346_v60, 4  ;;  %v356_v63 = vsel %vm355_vm13, %v616_v35, %v352_v57 }
  0x6e   : > { %v366_v0 = vsel %vm365_vm12, %v618_v37, %v362_v61 }
  0x6f   : > { %v375_v1 = vsel %vm224_vm0, %v336_v59, %v373_v62  ;;  %v374_v2 = vrot.slane %v366_v0, 4 }
  0x70   : > { %v379_v3 = vmul.f32 %v375_v1, %v851_v52 }
  0x71   : > { %v376_v4 = vsel %vm224_vm0, %v356_v63, %v374_v2 }
  0x72   : > { %388 = vst [vmem:[#allocation1] ss:$2 sm:$0xff] %v379_v3  ;;  %v380_v5 = vmul.f32 %v376_v4, %v853_v53 }
  0x74   : > { %390 = vst [vmem:[#allocation1 + $0x10] ss:$2 sm:$0xff] %v380_v5 }
  0x79   : > { %v392_v7 = vld.sshfl [vmem:[#allocation1 + $0x8] sm:$0xff pattern:$0x75316420]  ;;  %v391_v9 = vld.sshfl [vmem:[#allocation1] sm:$0xff pattern:$0x75316420] }
  0x7b   : > { %v394_v8 = vld.sshfl [vmem:[#allocation1 + $0x18] sm:$0xff pattern:$0x75316420]  ;;  %v393_v10 = vld.sshfl [vmem:[#allocation1 + $0x10] sm:$0xff pattern:$0x75316420] }
  0x94   : > { %v384_v6 = vpop.permute.xlu0 %383 }
  0x95   : > { %v400_v11 = vmul.f32 %v392_v7, %v384_v6  ;;  %v402_v12 = vmul.f32 %v394_v8, %v384_v6  ;;  %v399_v13 = vmul.f32 %v391_v9, %v384_v6  ;;  %v401_v14 = vmul.f32 %v393_v10, %v384_v6 }
  0x9c   : > { %v406_v52 = vpop.permute.xlu0 %405 }
  0x9d   : > { %v409_v15 = vadd.f32 %v406_v52, %v400_v11  ;;  %v411_v53 = vadd.f32 %v406_v52, %v402_v12  ;;  %v408_v16 = vadd.f32 %v406_v52, %v399_v13  ;;  %v410_v17 = vadd.f32 %v406_v52, %v401_v14 }
  0x9f   : > { %v416_v18 = vrot.slane %v409_v15, 4  ;;  %v417_v19 = vrot.slane %v411_v53, 4 }
  0xa1   : > { %v418_v20 = vsel %vm224_vm0, %v408_v16, %v416_v18  ;;  %v419_v21 = vsel %vm224_vm0, %v410_v17, %v417_v19 }
  0xa2   : > { %422 = vst [vmem:[%s206_s6] sm:$0xff] %v418_v20 }
  0xa3   : > { %423 = vst [vmem:[%s206_s6 + $0x8] sm:$0xff] %v419_v21 }
  0xa4   : > { %676 = shalt.err (!%p673_p13)
}
  0xa5   : > { %546 = dma.vmem_to_hbm [thread:$0]  (%p806_p9), %s441_s7, 256, %s443_s15, %s425_s8  }
  0xa6 PF: > { %s454_s11 = sand.u32 1, %s711_s12   ;;  %p553_p0 = pnand %p530_p12, %p813_p11 }
  0xa7   : > { %s455_s28 = scalar_lea.sflag [#allocation4], %s454_s11 }
  0xa8   : > { %p554_p1 = pneg %p553_p0 }
  0xaa   : > { %706 = dma.done.wait (%p554_p1), %s455_s28, 256  }
  0xab   : > { %708 = vsyncadd (%p554_p1), %s455_s28, 4294967040  ;;  %s19_s17 = sadd.s32 1, %s731_s17   ;;  %s933_s12 = smov %s715_s13 }
  0xac   : > { %p16_p2 = scmp.ge.s32.totalorder %s19_s17, 4   ;;  %s934_s13 = smov %s719_s14 }
  0xad   : > { %s935_s14 = smov %s811_s26  ;;  %s936_s15 = smov %s727_s16 }
  0xae   : > { %s937_s16 = smov %s939_s20  ;;  %18 = sbr.rel (!%p16_p2) target bundleno = 6 (0x6), region = 80 }
  0xb3   :  { %461 = vsyncpa [#allocation3], 1 }
  0xb4   :  { %463 = vsyncpa [#allocation3 + $0x1], 1 }
  0xb5   :  { %464 = vsyncpa [#allocation4], 1 }
  0xb6   :  { %466 = vsyncpa [#allocation4 + $0x1], 1 }

</bundles_post_ra>
